<compile_context>
chip_gen: v7x
topology: tpu7x:2x2x1
jax: 0.10.0
libtpu: 0.0.40
codegen_flags: <defaults>
</compile_context>

<pallas_src>
import math

import jax
import jax.numpy as jnp
from jax.experimental import pallas as pl
from jax.experimental.pallas import tpu as pltpu

BN_EPS = 1e-5


def _round_up(x, m):
    return ((x + m - 1) // m) * m


# --------------------------------------------------------------------------
# Fused kernel: two block-diagonal matmuls (concat realized by column layout)
# + one bias add.  BatchNorm is already folded into wp / bias.
# --------------------------------------------------------------------------
def _encode_kernel(feat_ref, pe_ref, wf_ref, wp_ref, bias_ref, out_ref):
    acc = jnp.dot(feat_ref[...], wf_ref[...], preferred_element_type=jnp.float32)
    acc = acc + jnp.dot(pe_ref[...], wp_ref[...], preferred_element_type=jnp.float32)
    out_ref[...] = (acc + bias_ref[...]).astype(out_ref.dtype)


# --------------------------------------------------------------------------
# Node-packing factor: smallest/biggest g so the packed output is a lane-dense
# multiple of 128 (target 256-512 lanes), preferring g that divides N so the
# packing reshape is a zero-copy bitcast.
# --------------------------------------------------------------------------
def _pick_group(n, h, *, target_lanes=512):
    g0 = 128 // math.gcd(h, 128)          # smallest g with (g*h) % 128 == 0
    if g0 * h > 2 * target_lanes:
        # Pathological h (lcm(h,128) huge): packing would need oversized
        # block-diagonal weights.  Fall back to unpacked rows.
        # TODO(synk): this rare path uses masked (<128-lane) stores.
        return 1, 0
    cands = [g0]
    max_growth = max(g0, 32)               # bound MXU-FLOP blowup (v5e)
    while cands[-1] * 2 * h <= target_lanes and cands[-1] * 2 <= max_growth:
        cands.append(cands[-1] * 2)
    for c in reversed(cands):
        if n % c == 0:
            return c, 0                    # reshape is a free bitcast
    c = cands[-1]
    return c, (-n) % c                     # small (<g rows) zero-pad fallback


def _build_grouped_params(w1, b1, w2f, b2f, g, mm_dtype):
    """Block-diagonal weights mapping g packed nodes -> g packed outputs."""
    d_feat, h1 = w1.shape
    d_pe, h2 = w2f.shape
    h = h1 + h2
    w1f = w1.astype(jnp.float32)
    wf = jnp.zeros((g * d_feat, g * h), jnp.float32)
    wp = jnp.zeros((g * d_pe, g * h), jnp.float32)
    for k in range(g):  # static Python loop over tiny D-sized blocks
        wf = wf.at[k * d_feat:(k + 1) * d_feat, k * h:k * h + h1].set(w1f)
        wp = wp.at[k * d_pe:(k + 1) * d_pe, k * h + h1:(k + 1) * h].set(w2f)
    bias_row = jnp.concatenate([b1.reshape(-1).astype(jnp.float32),
                                b2f.reshape(-1)])
    bias = jnp.tile(bias_row, g)[None, :]                     # (1, g*h) f32
    return wf.astype(mm_dtype), wp.astype(mm_dtype), bias


def concat_node_encoder(feature, pe, params, *, block_rows=4096, out_dtype=None):
    """feature: [N, D_FEAT], pe: [N, D_PE_IN] -> [N, dim_hidden]."""
    n, d_feat = feature.shape
    n2, d_pe = pe.shape
    assert n == n2, (n, n2)
    w1, b1 = params["w1"], params["b1"]
    w2, b2 = params["w2"], params["b2"]
    gamma, beta = params["gamma"], params["beta"]
    h1 = w1.shape[1]
    h2 = w2.shape[1]
    h = h1 + h2
    in_dtype = feature.dtype
    out_dtype = in_dtype if out_dtype is None else out_dtype
    if n == 0:
        return jnp.zeros((0, h), out_dtype)

    # ---- BatchNorm batch statistics (training mode, biased variance) ------
    # Plain XLA two-pass reduction: full HBM bandwidth, exact PyTorch numerics,
    # no padding, no extra kernel launch (per perf review).  Stats stay f32.
    pe32 = pe.astype(jnp.float32)
    mean = jnp.mean(pe32, axis=0, keepdims=True)                  # (1, d_pe)
    var = jnp.mean(jnp.square(pe32 - mean), axis=0, keepdims=True)
    inv_std = jax.lax.rsqrt(var + BN_EPS)

    # ---- fold the BN affine into the pe-side linear ------------------------
    scale = gamma.reshape(1, -1).astype(jnp.float32) * inv_std    # (1, d_pe)
    shift = beta.reshape(1, -1).astype(jnp.float32) - mean * scale
    w2f = scale.reshape(-1, 1) * w2.astype(jnp.float32)           # (d_pe, h2)
    b2f = shift @ w2.astype(jnp.float32) + b2.reshape(1, -1).astype(jnp.float32)

    # ---- node packing for lane-dense tiles ---------------------------------
    g, pad = _pick_group(n, h)
    wf, wp, bias = _build_grouped_params(w1, b1, w2f, b2f, g, in_dtype)

    if pad:  # rare fallback: no lane-dense g divides N -> pad by < g rows
        feature = jnp.pad(feature, ((0, pad), (0, 0)))
        pe = jnp.pad(pe, ((0, pad), (0, 0)))
    rows = (n + pad) // g
    feat_g = feature.reshape(rows, g * d_feat)   # row-major reshape: no copy
    pe_g = pe.reshape(rows, g * d_pe)

    # ---- row tiling: VMEM-aware, ragged last tile via cdiv grid ------------
    itemsize_in = jnp.dtype(in_dtype).itemsize
    itemsize_out = jnp.dtype(out_dtype).itemsize
    sub = 16 if min(itemsize_in, itemsize_out) < 4 else 8
    bytes_per_row = (g * (d_feat + d_pe)) * itemsize_in + (g * h) * itemsize_out
    w_bytes = (g * (d_feat + d_pe) + 1) * (g * h) * max(itemsize_in, 4)
    budget = 10 * 1024 * 1024 - 2 * w_bytes      # fits v5e 16 MiB scoped VMEM
    budget = max(budget, 2 * 1024 * 1024)
    row_cap = max(sub, budget // (2 * bytes_per_row))
    row_tile = max(sub, (min(block_rows, row_cap) // sub) * sub)
    if rows <= row_tile:
        if rows >= 2 * sub:
            # split into ~2 tiles so ("parallel",) can use both v7x TCs
            row_tile = _round_up((rows + 1) // 2, sub)
        else:
            row_tile = rows                      # single full-extent block
    grid = pl.cdiv(rows, row_tile)

    out_g = pl.pallas_call(
        _encode_kernel,
        out_shape=jax.ShapeDtypeStruct((rows, g * h), out_dtype),
        grid_spec=pltpu.PrefetchScalarGridSpec(
            num_scalar_prefetch=0,
            grid=(grid,),
            in_specs=[
                pl.BlockSpec((row_tile, g * d_feat), lambda i: (i, 0)),
                pl.BlockSpec((row_tile, g * d_pe), lambda i: (i, 0)),
                # constant-index operands stay VMEM resident across the grid
                pl.BlockSpec((g * d_feat, g * h), lambda i: (0, 0)),   # wf
                pl.BlockSpec((g * d_pe, g * h), lambda i: (0, 0)),     # wp
                pl.BlockSpec((1, g * h), lambda i: (0, 0)),            # bias
            ],
            out_specs=pl.BlockSpec((row_tile, g * h), lambda i: (i, 0))),
        compiler_params=pltpu.CompilerParams(
            dimension_semantics=("parallel",)),   # megacore-shardable on v7x
    )(feat_g, pe_g, wf, wp, bias)

    out = out_g.reshape(rows * g, h)
    if pad:
        out = out[:n]
    return out


# --------------------------------------------------------------------------
# Reference + demo
# --------------------------------------------------------------------------
def reference(feature, pe, params):
    h1 = feature @ params["w1"] + params["b1"]
    mean = jnp.mean(pe, axis=0, keepdims=True)
    var = jnp.mean((pe - mean) ** 2, axis=0, keepdims=True)
    pe_n = (pe - mean) / jnp.sqrt(var + BN_EPS) * params["gamma"] + params["beta"]
    h2 = pe_n @ params["w2"] + params["b2"]
    return jnp.concatenate([h1, h2], axis=1)


def init_params(key, dim_feat_in, dim_pe_in, dim_hidden, dim_pe):
    h1 = dim_hidden - dim_pe
    k1, k2 = jax.random.split(key)
    return {
        "w1": (jax.random.normal(k1, (dim_feat_in, h1), jnp.float32)
               / jnp.sqrt(dim_feat_in)),
        "b1": jnp.full((1, h1), 0.01, jnp.float32),
        "gamma": jnp.ones((1, dim_pe_in), jnp.float32) * 1.1,
        "beta": jnp.full((1, dim_pe_in), 0.05, jnp.float32),
        "w2": (jax.random.normal(k2, (dim_pe_in, dim_pe), jnp.float32)
               / jnp.sqrt(dim_pe_in)),
        "b2": jnp.full((1, dim_pe), -0.01, jnp.float32),
    }


if __name__ == "__main__":
    # 100 nodes (exercises the ragged cdiv grid with zero-copy packing),
    # 16-dim features, 8-dim raw PE, dim_hidden=32, dim_pe=8
    # -> encoder1 emits 24 dims, encoder2 emits 8.
    N, D_FEAT, D_PE_IN = 100, 16, 8
    DIM_HIDDEN, DIM_PE = 32, 8

    root = jax.random.PRNGKey(0)
    k_feat, k_pe, k_params = jax.random.split(root, 3)

    feature = jax.random.normal(k_feat, (N, D_FEAT), jnp.float32)
    pe = jax.random.normal(k_pe, (N, D_PE_IN), jnp.float32)
    params = init_params(k_params, D_FEAT, D_PE_IN, DIM_HIDDEN, DIM_PE)

    ref = reference(feature, pe, params)

    # f32 path (exact module semantics).
    out = jax.block_until_ready(concat_node_encoder(feature, pe, params))
    assert out.shape == (N, DIM_HIDDEN), out.shape
    max_err = float(jnp.max(jnp.abs(out - ref)))
    assert jnp.allclose(out, ref, atol=1e-4, rtol=1e-4), (
        f"f32 mismatch vs reference: max abs err = {max_err}")

    # bf16 I/O path (f32 accumulation + f32 BN stats inside the wrapper).
    out_bf16 = jax.block_until_ready(
        concat_node_encoder(feature.astype(jnp.bfloat16),
                            pe.astype(jnp.bfloat16), params))
    assert out_bf16.shape == (N, DIM_HIDDEN), out_bf16.shape
    assert out_bf16.dtype == jnp.bfloat16, out_bf16.dtype
    max_err_b = float(jnp.max(jnp.abs(out_bf16.astype(jnp.float32) - ref)))
    assert max_err_b < 0.15, f"bf16 mismatch vs reference: max abs err = {max_err_b}"

    print("KERNEL_OK")
</pallas_src>

<mosaic_0001>
module attributes {stable_mosaic.version = 11 : i64} {
  func.func @_encode_kernel(%arg0: i32, %arg1: memref<16x64xf32, #tpu.memory_space<vmem>>, %arg2: memref<16x32xf32, #tpu.memory_space<vmem>>, %arg3: memref<64x128xf32, #tpu.memory_space<vmem>>, %arg4: memref<32x128xf32, #tpu.memory_space<vmem>>, %arg5: memref<1x128xf32, #tpu.memory_space<vmem>>, %arg6: memref<16x128xf32, #tpu.memory_space<vmem>>) attributes {dimension_semantics = [#tpu.dimension_semantics<parallel>], iteration_bounds = array<i64: 2>, scalar_prefetch = 0 : i64, scratch_operands = 0 : i64, tpu.core_type = #tpu.core_type<tc>, window_params = [{transform_indices = @transform_0, window_bounds = array<i64: 16, 64>}, {transform_indices = @transform_1, window_bounds = array<i64: 16, 32>}, {pipeline_mode = #tpu.pipeline_mode<synchronous>, transform_indices = @transform_2, window_bounds = array<i64: 64, 128>}, {pipeline_mode = #tpu.pipeline_mode<synchronous>, transform_indices = @transform_3, window_bounds = array<i64: 32, 128>}, {pipeline_mode = #tpu.pipeline_mode<synchronous>, transform_indices = @transform_4, window_bounds = array<i64: 1, 128>}, {transform_indices = @transform_5, window_bounds = array<i64: 16, 128>}]} {
    %c0 = arith.constant 0 : index
    %c0_0 = arith.constant 0 : index
    %0 = vector.load %arg1[%c0, %c0_0] : memref<16x64xf32, #tpu.memory_space<vmem>>, vector<16x64xf32>
    %c0_1 = arith.constant 0 : index
    %c0_2 = arith.constant 0 : index
    %1 = vector.load %arg3[%c0_1, %c0_2] : memref<64x128xf32, #tpu.memory_space<vmem>>, vector<64x128xf32>
    %cst = arith.constant dense<0.000000e+00> : vector<16x128xf32>
    %2 = tpu.matmul %0, %1, %cst {dimension_numbers = #tpu.dot_dimension_numbers<[1], [0], [0], [1], [0, 0, 1, 1], [], []>} : vector<16x64xf32>, vector<64x128xf32>, vector<16x128xf32> -> vector<16x128xf32>
    %c0_3 = arith.constant 0 : index
    %c0_4 = arith.constant 0 : index
    %3 = vector.load %arg2[%c0_3, %c0_4] : memref<16x32xf32, #tpu.memory_space<vmem>>, vector<16x32xf32>
    %c0_5 = arith.constant 0 : index
    %c0_6 = arith.constant 0 : index
    %4 = vector.load %arg4[%c0_5, %c0_6] : memref<32x128xf32, #tpu.memory_space<vmem>>, vector<32x128xf32>
    %cst_7 = arith.constant dense<0.000000e+00> : vector<16x128xf32>
    %5 = tpu.matmul %3, %4, %cst_7 {dimension_numbers = #tpu.dot_dimension_numbers<[1], [0], [0], [1], [0, 0, 1, 1], [], []>} : vector<16x32xf32>, vector<32x128xf32>, vector<16x128xf32> -> vector<16x128xf32>
    %6 = arith.addf %2, %5 : vector<16x128xf32>
    %c0_8 = arith.constant 0 : index
    %c0_9 = arith.constant 0 : index
    %7 = vector.load %arg5[%c0_8, %c0_9] : memref<1x128xf32, #tpu.memory_space<vmem>>, vector<1x128xf32>
    %8 = vector.broadcast %7 : vector<1x128xf32> to vector<16x128xf32>
    %9 = arith.addf %6, %8 : vector<16x128xf32>
    %c0_10 = arith.constant 0 : index
    %c0_11 = arith.constant 0 : index
    %10 = vector.load %arg6[%c0_10, %c0_11] : memref<16x128xf32, #tpu.memory_space<vmem>>, vector<16x128xf32>
    tpu.vector_store %arg6[%c0_10, %c0_11], %9 {strides = array<i32>} : memref<16x128xf32, #tpu.memory_space<vmem>>, vector<16x128xf32>,
    return
  }
  func.func @transform_0(%arg0: i32) -> (i32, i32) {
    %c0_i32 = arith.constant 0 : i32
    %c0_i32_0 = arith.constant 0 : i32
    return %arg0, %c0_i32 : i32, i32
  }
  func.func @transform_1(%arg0: i32) -> (i32, i32) {
    %c0_i32 = arith.constant 0 : i32
    %c0_i32_0 = arith.constant 0 : i32
    return %arg0, %c0_i32 : i32, i32
  }
  func.func @transform_2(%arg0: i32) -> (i32, i32) {
    %c0_i32 = arith.constant 0 : i32
    %c0_i32_0 = arith.constant 0 : i32
    %c0_i32_1 = arith.constant 0 : i32
    return %c0_i32, %c0_i32_0 : i32, i32
  }
  func.func @transform_3(%arg0: i32) -> (i32, i32) {
    %c0_i32 = arith.constant 0 : i32
    %c0_i32_0 = arith.constant 0 : i32
    %c0_i32_1 = arith.constant 0 : i32
    return %c0_i32, %c0_i32_0 : i32, i32
  }
  func.func @transform_4(%arg0: i32) -> (i32, i32) {
    %c0_i32 = arith.constant 0 : i32
    %c0_i32_0 = arith.constant 0 : i32
    %c0_i32_1 = arith.constant 0 : i32
    return %c0_i32, %c0_i32_0 : i32, i32
  }
  func.func @transform_5(%arg0: i32) -> (i32, i32) {
    %c0_i32 = arith.constant 0 : i32
    %c0_i32_0 = arith.constant 0 : i32
    return %arg0, %c0_i32 : i32, i32
  }
}

</mosaic_0001>

<bundles_post_ra>
// kernel: tpu_custom_call.1
= control target key start
LH: loop header
LB: loop body
LE: loop exit
PB: predicated region body
PF: predicated region fallthrough
CT: control target
= control target key end

     0   :  { %s1360_s0 = inlined_call_operand.hbm [shape: f32[25,64], index: 0, kind: input, shape index: {}]   ;;  %s1361_s1 = inlined_call_operand.hbm [shape: f32[25,32], index: 1, kind: input, shape index: {}]   ;;  %s1362_s2 = inlined_call_operand.hbm [shape: f32[64,128], index: 2, kind: input, shape index: {}]   ;;  %s1363_s3 = inlined_call_operand.hbm [shape: f32[32,128], index: 3, kind: input, shape index: {}]   ;;  %s1364_s4 = inlined_call_operand.vmem [shape: f32[1,128], index: 4, kind: input, shape index: {}]   ;;  %s1365_s5 = inlined_call_operand.hbm [shape: f32[25,128], index: 5, kind: output, shape index: {}]  }
   0x1   :  { %1373 = sst [smem:[#allocation16_spill]] %s1360_s0 }
   0x2   :  { %1374 = sst [smem:[#allocation17_spill]] %s1362_s2 }
   0x3   :  { %10 = vsyncpa [#allocation3], 0 }
   0x4   :  { %12 = vsyncpa [#allocation3 + $0x1], 0 }
   0x5   :  { %13 = vsyncpa [#allocation6], 0 }
   0x6   :  { %15 = vsyncpa [#allocation6 + $0x1], 0 }
   0x7   :  { %16 = vsyncpa [#allocation9], 0 }
   0x8   :  { %17 = vsyncpa [#allocation4], 0 }
   0x9   :  { %19 = vsyncpa [#allocation4 + $0x1], 0  ;;  %s1048_s18 = smov 0   ;;  %s1050_s19 = smov 0  }
   0xa   :  { %s1052_s20 = smov 0   ;;  %s1054_s21 = smov 0  }
   0xb LB: > { %s1069_s22 = sadd.s32 4294967295, %s1007_s21   ;;  %s635_s23 = sadd.s32 4294967294, %s1007_s21   ;;  %s1007_s21 = sphi %s1054_s21, %s1397_s21   ;;  %s1003_s20 = sphi %s1052_s20, %s1396_s20   ;;  %s999_s19 = sphi %s1050_s19, %s1395_s19   ;;  %s995_s18 = sphi %s1048_s18, %s1394_s18  }
   0xc   : > { %p45_p0 = scmp.ne.s32.totalorder %s999_s19, %s995_s18  ;;  %p1366_p1 = scmp.eq.s32.totalorder %s1069_s22, 0 }
   0xd   : > { %p164_p3 = scmp.eq.s32.totalorder %s635_s23, 1  ;;  %p636_p5 = scmp.ge.s32.totalorder %s1007_s21, 1 }
   0xe   : > { %p1078_p4 = por %p1366_p1, %p45_p0  ;;  %p171_p7 = scmp.lt.s32.totalorder %s1007_s21, 3 }
   0xf   : > { %p1083_p6 = por %p164_p3, %p45_p0  ;;  %s1009_s27 = smov [#allocation7]  }
  0x10   : > { %s1375_s24 = scalar_select %p1078_p4, 1, 0 }
  0x11   : > { %s1376_s25 = scalar_select %p1083_p6, 1, 0 }
  0x12   : > { %p1088_p8 = pnand %p636_p5, %p171_p7  ;;  %s183_s28 = sshll.u32 %s1009_s27, 4  ;;  %s1092_s28 = int_to_ptr.vmem [resolvable:$true] %s183_s28 }
  0x13   : > { %s1010_s30 = smov [#allocation8]   ;;  %s1379_s2 = sld [smem:[#allocation17_spill]] }
  0x14   : > { %p751_p9 = pneg %p1088_p8  ;;  %s196_s6 = sshll.u32 %s1010_s30, 4  ;;  %s1103_s6 = int_to_ptr.vmem [resolvable:$true] %s196_s6 }
  0x16   : > { %p1099_p11 = pnand %p751_p9, %p1366_p1 }
  0x18   : > { %p815_p13 = pneg %p1099_p11 }
  0x19   : > { %s813_s9 = scalar_lea.hbm %s1379_s2, 1024 }
  0x1a   : > { %p814_p12 = scmp.ne.s32.totalorder %s1379_s2, %s813_s9  ;;  %p820_p5 = scmp.lt.u32.totalorder %s813_s9, %s1379_s2 }
  0x1c   : > { %p816_p0 = pnand %p815_p13, %p814_p12 }
  0x1e   : > { %p817_p3 = pneg %p816_p0 }
  0x20   : > { %p822_p7 = pnand %p820_p5, %p817_p3 }
  0x22   : > { %825 = shalt.err (!%p822_p7)
}
  0x23   : > { %s826_s14 = scalar_lea.vmem %s1092_s28, 1024  ;;  %p834_p2 = scmp.lt.s32.totalorder %s1092_s28, %s1092_s28 }
  0x24   : > { %p827_p9 = scmp.ne.s32.totalorder %s1092_s28, %s826_s14  ;;  %p835_p12 = scmp.lt.s32.totalorder %s826_s14, %s826_s14 }
  0x26   : > { %p829_p10 = pnand %p827_p9, %p815_p13  ;;  %p836_p0 = por %p835_p12, %p834_p2 }
  0x28   : > { %p830_p1 = pneg %p829_p10 }
  0x2a   : > { %p837_p6 = pnand %p836_p0, %p830_p1 }
  0x2c   : > { %840 = shalt.err (!%p837_p6)
}
  0x2d   : > { %s1367_s15 = smov 128   ;;  %s1369_s16 = smov 8  }
  0x2e   : > { %754 = dma.hbm_to_vmem [thread:$0]  (!%p1099_p11), %s1379_s2, 1024, %s1092_s28, [#allocation6], %s1367_s15, %s1367_s15, %s1369_s16  }
  0x2f   : > { %s841_s7 = scalar_lea.hbm %s1363_s3, 512 }
  0x30   : > { %p842_p1 = scmp.ne.s32.totalorder %s1363_s3, %s841_s7  ;;  %p848_p10 = scmp.lt.u32.totalorder %s841_s7, %s1363_s3 }
  0x32   : > { %p844_p2 = pnand %p842_p1, %p815_p13 }
  0x34   : > { %p845_p6 = pneg %p844_p2 }
  0x36   : > { %p850_p3 = pnand %p848_p10, %p845_p6 }
  0x38   : > { %853 = shalt.err (!%p850_p3)
}
  0x39   : > { %s854_s28 = scalar_lea.vmem %s1103_s6, 512  ;;  %p862_p12 = scmp.lt.s32.totalorder %s1103_s6, %s1103_s6 }
  0x3a   : > { %p855_p5 = scmp.ne.s32.totalorder %s1103_s6, %s854_s28  ;;  %p863_p0 = scmp.lt.s32.totalorder %s854_s28, %s854_s28 }
  0x3c   : > { %p857_p7 = pnand %p855_p5, %p815_p13  ;;  %p864_p1 = por %p863_p0, %p862_p12 }
  0x3e   : > { %p858_p9 = pneg %p857_p7 }
  0x40   : > { %p865_p2 = pnand %p864_p1, %p858_p9 }
  0x42   : > { %868 = shalt.err (!%p865_p2)
}
  0x43   : > { %757 = dma.hbm_to_vmem [thread:$0]  (!%p1099_p11), %s1363_s3, 512, %s1103_s6, [#allocation9], %s1367_s15, %s1367_s15, %s1369_s16  }
  0x44   : > { %s1164_s29 = sadd.s32 1, %s1007_s21   ;;  %s32_s14 = sadd.s32 1, %s1003_s20 }
  0x45   : > { %s29_s17 = ssub.s32 %s1007_s21, %s1164_s29  ;;  %p39_p13 = scmp.ne.s32.totalorder %s1003_s20, %s999_s19 }
  0x46   : > { %p30_p6 = scmp.eq.s32.totalorder %s29_s17, 0  ;;  %p40_p10 = scmp.eq.s32.totalorder %s1007_s21, 0 }
  0x47   : > { %p1380_p3 = scmp.eq.s32.totalorder %s1069_s22, 1  ;;  %p771_p7 = scmp.lt.s32.totalorder %s1007_s21, 2 }
  0x48   : > { %s1180_s27 = scalar_select %p30_p6, %s1003_s20, %s32_s14  }
  0x49   : > { %p1174_p5 = por %p1380_p3, %p39_p13  ;;  %p41_p9 = por %p40_p10, %p39_p13 }
  0x4a   : > { %s213_s30 = sand.u32 1, %s1003_s20   ;;  %s662_s6 = sshll.u32 %s1007_s21, 8 }
  0x4b   : > { %s1381_s23 = scalar_select %p1174_p5, 1, 0 }
  0x4c   : > { %s640_s7 = sshll.u32 %s213_s30, 4  ;;  %s1382_s0 = sld [smem:[#allocation16_spill]] }
  0x4d   : > { %s217_s11 = scalar_lea.vmem [#allocation2], %s640_s7  ;;  %p1191_p11 = pnand %p771_p7, %p41_p9 }
  0x4e   : > { %s224_s28 = sshll.u32 %s217_s11, 4  ;;  %s1198_s17 = scalar_lea.hbm %s1361_s1, %s662_s6  ;;  %s1189_s28 = int_to_ptr.vmem [resolvable:$true] %s224_s28 }
  0x4f   : > { %s238_s8 = scalar_lea.vmem [#allocation5], %s640_s7  ;;  %s1202_s15 = scalar_lea.sflag [#allocation3], %s213_s30 }
  0x50   : > { %s1200_s9 = sshll.u32 %s238_s8, 4  ;;  %p871_p0 = pneg %p1191_p11  ;;  %s1234_s9 = int_to_ptr.vmem [resolvable:$true] %s1200_s9 }
  0x52   : > { %s1187_s10 = scalar_lea.hbm %s1382_s0, %s662_s6  ;;  %s874_s13 = scalar_lea.hbm %s1382_s0, 512 }
  0x53   : > { %s869_s11 = scalar_lea.hbm %s1187_s10, 256  ;;  %p875_p13 = scmp.lt.u32.totalorder %s1187_s10, %s1382_s0 }
  0x54   : > { %p870_p12 = scmp.ne.s32.totalorder %s1187_s10, %s869_s11  ;;  %p876_p6 = scmp.lt.u32.totalorder %s874_s13, %s869_s11 }
  0x55   : > { %p878_p3 = scmp.lt.u32.totalorder %s869_s11, %s1187_s10 }
  0x56   : > { %p872_p1 = pnand %p871_p0, %p870_p12  ;;  %p877_p10 = por %p876_p6, %p875_p13 }
  0x58   : > { %p873_p2 = pneg %p872_p1  ;;  %p879_p7 = por %p878_p3, %p877_p10 }
  0x5a   : > { %p880_p9 = pnand %p879_p7, %p873_p2 }
  0x5c   : > { %883 = shalt.err (!%p880_p9)
}
  0x5d   : > { %s884_s30 = scalar_lea.vmem %s1189_s28, 256  ;;  %s1013_s2 = smov [#allocation2]  }
  0x5e   : > { %p885_p12 = scmp.ne.s32.totalorder %s1189_s28, %s884_s30  ;;  %s889_s16 = sshll.u32 %s1013_s2, 4  ;;  %s890_s16 = int_to_ptr.vmem [resolvable:$false] %s889_s16 }
  0x5f   : > { %s891_s7 = scalar_lea.vmem %s890_s16, 512  ;;  %p892_p4 = scmp.lt.s32.totalorder %s1189_s28, %s890_s16 }
  0x60   : > { %p887_p1 = pnand %p885_p12, %p871_p0  ;;  %p893_p13 = scmp.lt.s32.totalorder %s891_s7, %s884_s30 }
  0x62   : > { %p888_p5 = pneg %p887_p1  ;;  %p894_p6 = por %p893_p13, %p892_p4 }
  0x64   : > { %p895_p10 = pnand %p894_p6, %p888_p5 }
  0x66   : > { %898 = shalt.err (!%p895_p10)
}
  0x67   : > { %s1384_s8 = smov 8   ;;  %s1385_s11 = smov 128  }
  0x68   : > { %761 = dma.hbm_to_vmem [thread:$0]  (!%p1191_p11), %s1187_s10, 256, %s1189_s28, %s1202_s15, %s1385_s11, %s1385_s11, %s1384_s8  }
  0x69   : > { %s234_s13 = sand.u32 1, %s1007_s21   ;;  %s899_s6 = scalar_lea.hbm %s1198_s17, 256 }
  0x6a   : > { %s1237_s14 = scalar_lea.sflag [#allocation6], %s234_s13  ;;  %p900_p4 = scmp.ne.s32.totalorder %s1198_s17, %s899_s6 }
  0x6b   : > { %s904_s16 = scalar_lea.hbm %s1361_s1, 512  ;;  %p905_p3 = scmp.lt.u32.totalorder %s1198_s17, %s1361_s1 }
  0x6c   : > { %p902_p5 = pnand %p900_p4, %p871_p0  ;;  %p906_p7 = scmp.lt.u32.totalorder %s904_s16, %s899_s6 }
  0x6d   : > { %p908_p12 = scmp.lt.u32.totalorder %s899_s6, %s1198_s17 }
  0x6e   : > { %p903_p2 = pneg %p902_p5  ;;  %p907_p9 = por %p906_p7, %p905_p3 }
  0x70   : > { %p909_p1 = por %p908_p12, %p907_p9 }
  0x72   : > { %p910_p13 = pnand %p909_p1, %p903_p2 }
  0x74   : > { %913 = shalt.err (!%p910_p13)
}
  0x75   : > { %s914_s15 = scalar_lea.vmem %s1234_s9, 256  ;;  %s1014_s10 = smov [#allocation5]  }
  0x76   : > { %p915_p6 = scmp.ne.s32.totalorder %s1234_s9, %s914_s15  ;;  %s919_s28 = sshll.u32 %s1014_s10, 4  ;;  %s920_s28 = int_to_ptr.vmem [resolvable:$false] %s919_s28 }
  0x77   : > { %s921_s0 = scalar_lea.vmem %s920_s28, 512  ;;  %p922_p5 = scmp.lt.s32.totalorder %s1234_s9, %s920_s28 }
  0x78   : > { %p917_p10 = pnand %p915_p6, %p871_p0  ;;  %p923_p3 = scmp.lt.s32.totalorder %s921_s0, %s914_s15 }
  0x7a   : > { %p918_p4 = pneg %p917_p10  ;;  %p924_p7 = por %p923_p3, %p922_p5 }
  0x7c   : > { %p925_p9 = pnand %p924_p7, %p918_p4 }
  0x7e   : > { %928 = shalt.err (!%p925_p9)
}
  0x7f   : > { %764 = dma.hbm_to_vmem [thread:$0]  (!%p1191_p11), %s1198_s17, 256, %s1234_s9, %s1237_s14, %s1385_s11, %s1385_s11, %s1384_s8  }
  0x80   : > { %257 = sbr.rel (%p1088_p8) target bundleno = 396 (0x18c), region = 40  ;;  %s1269_s13 = sand.u32 (!%p1088_p8), 1, %s999_s19  }
  0x81   : > { %s1272_s6 = sshll.u32 (!%p1088_p8), %s1269_s13, 4  ;;  %s260_s12 = scalar_lea.sflag (!%p1088_p8), [#allocation3], %s1269_s13 }
  0x82   : > { %s263_s30 = scalar_lea.vmem (!%p1088_p8), [#allocation2], %s1272_s6  ;;  %p1386_p0 = scmp.ne.s32.totalorder (!%p1088_p8), %s1375_s24, 0 }
  0x87   : > { %974 = dma.done.wait (%p1386_p0), %s260_s12, 256  }
  0x88   : > { %976 = vsyncadd (%p1386_p0), %s260_s12, 4294967040  ;;  %s268_s26 = sand.u32 1, %s1069_s22   ;;  %s272_s9 = scalar_lea.vmem [#allocation5], %s1272_s6 }
  0x89   : > { %s269_s17 = scalar_lea.sflag [#allocation6], %s268_s26 }
  0x8a   : > { %978 = dma.done.wait (%p1386_p0), %s269_s17, 256  }
  0x8b   : > { %980 = vsyncadd (%p1386_p0), %s269_s17, 4294967040  ;;  %p1387_p8 = scmp.eq.s32.totalorder %s1069_s22, 0 }
  0x8d   : > { %982 = dma.done.wait (%p1387_p8), [#allocation6], 1024   ;;  %p1388_p11 = pmov %p1387_p8 }
  0x8e   : > { %p1389_p2 = pmov %p1387_p8 }
  0x8f   : > { %984 = vsyncadd (%p1388_p11), [#allocation6], 4294966272 }
  0x90   : > { %986 = dma.done.wait (%p1389_p2), [#allocation9], 512   ;;  %p1390_p12 = pmov %p1389_p2 }
  0x91   : > { %v317_v0 = vld [vmem:[#allocation7] sm:$0xff]  ;;  %v318_v1 = vld [vmem:[#allocation7 + $0x8] sm:$0xff]  ;;  %v319_v2 = vld [vmem:[#allocation7 + $0x10] sm:$0xff]  ;;  %vm331_vm0 = vcmask 261120   ;;  %vm413_vm1 = vcmask 523264   ;;  %s311_s24 = scalar_lea.vmem [#allocation10], %s1272_s6 }
  0x92   : > { %988 = vsyncadd (%p1390_p12), [#allocation9], 4294966784  ;;  %v719_v3 = vpack.c.bf16 %v318_v1, %v317_v0  ;;  %v320_v4 = vld [vmem:[#allocation7 + $0x18] sm:$0xff]  ;;  %v327_v5 = vld [vmem:[#allocation8] sm:$0xff]  ;;  %s520_s8 = sshll.u32 %s311_s24, 4  ;;  %s664_s2 = sshll.u32 %s1069_s22, 8  ;;  %s1311_s8 = int_to_ptr.vmem [resolvable:$true] %s520_s8 }
  0x93   : > { %v328_v6 = vld [vmem:[#allocation8 + $0x8] sm:$0xff]  ;;  %v723_v7 = vpack.c.bf16 %v320_v4, %v319_v2  ;;  %v321_v9 = vld [vmem:[#allocation7 + $0x20] sm:$0xff]  ;;  %v329_v11 = vld [vmem:[#allocation8 + $0x10] sm:$0xff]  ;;  %s1316_s15 = scalar_lea.hbm %s1365_s5, %s664_s2  ;;  %s507_s10 = scalar_lea.sflag [#allocation4], %s1269_s13 }
  0x94   : > { %v711_v8 = vpack.c.bf16 %v328_v6, %v327_v5  ;;  %v322_v10 = vld [vmem:[#allocation7 + $0x28] sm:$0xff]  ;;  %720 = vmatprep.subr.bf16.mxu0 %v719_v3  ;;  %v330_v12 = vld [vmem:[#allocation8 + $0x18] sm:$0xff]  ;;  %v325_v14 = vld [vmem:[%s272_s9] sm:$0xff]  ;;  %s929_s28 = scalar_lea.vmem %s1311_s8, 256  ;;  %p1391_p13 = scmp.ne.s32.totalorder %s1381_s23, 0 }
  0x95   : > { %722 = vmatpush3.bf16.msra.mxu0 %v719_v3  ;;  %v715_v13 = vpack.c.bf16 %v330_v12, %v329_v11  ;;  %v315_v15 = vld [vmem:[%s263_s30] sm:$0xff]  ;;  %v727_v16 = vpack.c.bf16 %v322_v10, %v321_v9  ;;  %v324_v18 = vld [vmem:[#allocation7 + $0x38] sm:$0xff]  ;;  %689 = vmatprep.mubr.msk.f32.mxu1 %vm331_vm0, %v325_v14  ;;  %p930_p1 = scmp.ne.s32.totalorder %s1311_s8, %s929_s28  ;;  %s1015_s22 = smov [#allocation10]  }
  0x96   : > { %712 = vmatprep.subr.bf16.mxu1 %v711_v8  ;;  %724 = vmatprep.subr.bf16.mxu0 %v723_v7  ;;  %v323_v17 = vld [vmem:[#allocation7 + $0x30] sm:$0xff]  ;;  %v326_v20 = vld [vmem:[%s272_s9 + $0x8] sm:$0xff]  ;;  %v656_v25 = vld [vmem:[%s1364_s4] ss:$0 sm:$0xff]  ;;  %s933_s0 = sshll.u32 %s1015_s22, 4  ;;  %s934_s0 = int_to_ptr.vmem [resolvable:$false] %s933_s0 }
  0x97   : > { %714 = vmatpush3.bf16.msra.mxu1 %v711_v8  ;;  %708 = vmatprep.mubr.msk.f32.mxu0 %vm413_vm1, %v315_v15  ;;  %v731_v19 = vpack.c.bf16 %v324_v18, %v323_v17  ;;  %v316_v21 = vld [vmem:[%s263_s30 + $0x8] sm:$0xff]  ;;  %p931_p6 = pnand %p930_p1, %p1391_p13  ;;  %s935_s6 = scalar_lea.vmem %s934_s0, 512 }
  0x98   : > { %716 = vmatprep.subr.bf16.mxu1 %v715_v13  ;;  %p936_p4 = scmp.lt.s32.totalorder %s1311_s8, %s934_s0  ;;  %p937_p5 = scmp.lt.s32.totalorder %s935_s6, %s929_s28 }
  0x99   : > { %726 = vmatpush3.bf16.msra.mxu0 %v723_v7  ;;  %p932_p10 = pneg %p931_p6 }
  0x9a   : > { %728 = vmatprep.subr.bf16.mxu0 %v727_v16  ;;  %p938_p3 = por %p937_p5, %p936_p4 }
  0x9b   : > { %718 = vmatpush3.bf16.msra.mxu1 %v715_v13 }
  0x9c   : > { %p939_p7 = pnand %p938_p3, %p932_p10 }
  0x9d   : > { %730 = vmatpush3.bf16.msra.mxu0 %v727_v16 }
  0x9e   : > { %690 = vmatmul.mubr.msk.f32.vlgmr.msra.gmra.mrb[0].mxu1 %vm331_vm0, %v326_v20  ;;  %732 = vmatprep.subr.bf16.mxu0 %v731_v19 }
  0xa1   : > { %734 = vmatpush3.bf16.msra.mxu0 %v731_v19 }
  0xa4   : > { %709 = vmatmul.mubr.msk.f32.vlgmr.msra.gmra.mrb[0].mxu0 %vm413_vm1, %v316_v21 }
 0x171   : > { %v691_v22 = vpop.f32.mrb[0].mxu1 }
 0x172   : > { %v404_v23 = vpop.f32.mrb[1].mxu1 }
 0x177   : > { %v710_v24 = vpop.f32.mrb[0].mxu0 }
 0x178   : > { %v492_v26 = vadd.f32 %v710_v24, %v691_v22  ;;  %v486_v27 = vpop.f32.mrb[1].mxu0 }
 0x179   : > { %v487_v28 = vadd.f32 %v486_v27, %v404_v23 }
 0x17a   : > { %v503_v29 = vadd.f32 %v656_v25, %v492_v26 }
 0x17b   : > { %v502_v30 = vadd.f32 %v656_v25, %v487_v28 }
 0x17c   : > { %505 = vst [vmem:[%s311_s24 + $0x8] sm:$0xff] %v503_v29 }
 0x17d   : > { %504 = vst [vmem:[%s311_s24] sm:$0xff] %v502_v30 }
 0x17e   : > { %942 = shalt.err (!%p939_p7)
}
 0x17f   : > { %s943_s12 = scalar_lea.hbm %s1316_s15, 256  ;;  %s947_s17 = scalar_lea.hbm %s1365_s5, 512 }
 0x180   : > { %p944_p9 = scmp.ne.s32.totalorder %s1316_s15, %s943_s12  ;;  %p948_p11 = scmp.lt.u32.totalorder %s1316_s15, %s1365_s5 }
 0x181   : > { %p949_p2 = scmp.lt.u32.totalorder %s947_s17, %s943_s12  ;;  %p951_p1 = scmp.lt.u32.totalorder %s943_s12, %s1316_s15 }
 0x182   : > { %p945_p0 = pnand %p944_p9, %p1391_p13 }
 0x183   : > { %p950_p12 = por %p949_p2, %p948_p11 }
 0x184   : > { %p946_p8 = pneg %p945_p0 }
 0x185   : > { %p952_p6 = por %p951_p1, %p950_p12 }
 0x187   : > { %p953_p10 = pnand %p952_p6, %p946_p8 }
 0x189   : > { %956 = shalt.err (!%p953_p10)
}
 0x18a   : > { %s1016_s11 = smov 128   ;;  %s1017_s14 = smov 8  }
 0x18b   : > { %749 = dma.vmem_to_hbm [thread:$0]  (%p1391_p13), %s1311_s8, 256, %s1316_s15, %s507_s10, %s1016_s11, %s1016_s11, %s1017_s14  }
 0x18c PF: > { %s535_s2 = sand.u32 1, %s995_s18   ;;  %p1392_p4 = scmp.ne.s32.totalorder %s1376_s25, 0 }
 0x18d   : > { %p1393_p5 = scmp.ge.s32.totalorder %s1007_s21, 2  ;;  %s536_s16 = scalar_lea.sflag [#allocation4], %s535_s2 }
 0x18f   : > { %p766_p3 = pnand %p1393_p5, %p1392_p4 }
 0x191   : > { %990 = dma.done.wait (!%p766_p3), %s536_s16, 256  }
 0x192   : > { %992 = vsyncadd (!%p766_p3), %s536_s16, 4294967040  ;;  %p22_p7 = scmp.ge.s32.totalorder %s1164_s29, 4   ;;  %s1394_s18 = smov %s999_s19 }
 0x193   : > { %s1395_s19 = smov %s1003_s20  ;;  %s1396_s20 = smov %s1180_s27 }
 0x194   : > { %s1397_s21 = smov %s1164_s29  ;;  %24 = sbr.rel (!%p22_p7) target bundleno = 11 (0xb), region = 106 }
 0x19b   :  { %541 = vsyncpa [#allocation3], 1 }
 0x19c   :  { %543 = vsyncpa [#allocation3 + $0x1], 1 }
 0x19d   :  { %544 = vsyncpa [#allocation6], 1 }
 0x19e   :  { %546 = vsyncpa [#allocation6 + $0x1], 1 }
 0x19f   :  { %547 = vsyncpa [#allocation9], 1 }
 0x1a0   :  { %548 = vsyncpa [#allocation4], 1 }
 0x1a1   :  { %550 = vsyncpa [#allocation4 + $0x1], 1 }

</bundles_post_ra>
